<compile_context>
chip_gen: v7x
topology: tpu7x:2x2x1
jax: 0.10.0
libtpu: 0.0.40
codegen_flags: <defaults>
</compile_context>

<pallas_src>
import math

import jax
import jax.numpy as jnp
from jax import lax
from jax.experimental import pallas as pl
from jax.experimental.pallas import tpu as pltpu

CLAMP_MAX = math.log(1.0 / 0.01)  # = self.clamp_max in the PyTorch module
EPS = 1e-12                       # torch.nn.functional.normalize default eps


def _cosine_gate_kernel(x_ref, w_ref, b_ref, sim_ref, o_ref):
    # --- cosine_projector(x): x @ W + b (MXU, native-dtype operands, f32 acc) --
    proj = jnp.dot(x_ref[...], w_ref[...], preferred_element_type=jnp.float32)
    proj = proj + b_ref[...]                               # [tm, P] f32

    # --- F.normalize(proj, dim=1) via rsqrt-and-multiply ---------------------
    # 1/max(||row||, EPS) == rsqrt(max(sum(row^2), EPS^2))
    sumsq = jnp.sum(proj * proj, axis=-1, keepdims=True)   # [tm, 1]
    inv = lax.rsqrt(jnp.maximum(sumsq, EPS * EPS))         # [tm, 1] (EUP)
    proj_n = proj * inv                                     # VPU broadcast-mul

    # --- logits = proj_n @ (normalized sim * logit_scale)  (MXU) -------------
    # sim_ref already holds F.normalize(sim_matrix, dim=0) * exp(clamp(temp)),
    # which is grid-invariant and precomputed once in the wrapper.
    o_ref[...] = jnp.dot(
        proj_n, sim_ref[...], preferred_element_type=jnp.float32
    ).astype(o_ref.dtype)


def _round_up(a, m):
    return ((a + m - 1) // m) * m


def _choose_tm(N, D, x_itemsize, tm_max):
    """Largest row tile that (a) keeps the double-buffered x tile under a
    conservative VMEM budget and (b) leaves >= 2 grid steps when possible."""
    x_budget = 8 * 1024 * 1024  # bytes per single x buffer (x2 for double-buf)
    by_vmem = max(8, (x_budget // max(1, D * x_itemsize)) // 8 * 8)
    tm = min(tm_max, by_vmem)
    tm = min(tm, max(8, _round_up(pl.cdiv(N, 2), 8)))  # keep 2 steps (megacore)
    return tm


def cosine_topk_gate(x, w, b, sim_matrix, temperature, *, tm=512):
    """Pallas implementation of CosineTopKGate.forward.

    x:           [N, model_dim]
    w:           [model_dim, proj_dim]   (= cosine_projector.weight.T)
    b:           [proj_dim]              (= cosine_projector.bias)
    sim_matrix:  [proj_dim, num_experts]
    temperature: [1]                     (= log(1/init_t) parameter)
    returns logits [N, num_experts] (float32)
    """
    N, D = x.shape
    Dw, P = w.shape
    assert Dw == D
    Ps, E = sim_matrix.shape
    assert Ps == P

    # --- grid-invariant precompute (tiny: sim is [P, E]) ----------------------
    sim_f32 = sim_matrix.astype(jnp.float32)
    col_norm = jnp.sqrt(jnp.sum(sim_f32 * sim_f32, axis=0, keepdims=True))
    sim_n = sim_f32 / jnp.maximum(col_norm, EPS)            # F.normalize(dim=0)
    scale = jnp.exp(jnp.minimum(temperature.astype(jnp.float32)[0], CLAMP_MAX))
    sim_scaled = sim_n * scale                              # fold logit_scale in
    b2 = b.astype(jnp.float32).reshape(1, P)                # fold cast out too

    # --- tile choice + padding ------------------------------------------------
    x_itemsize = jnp.dtype(x.dtype).itemsize
    tm_eff = _choose_tm(N, D, x_itemsize, tm)
    N_pad = _round_up(N, tm_eff)
    x_in = jnp.pad(x, ((0, N_pad - N), (0, 0))) if N_pad != N else x

    cost = pl.CostEstimate(
        flops=2 * N_pad * (D * P + P * E),
        transcendentals=N_pad,  # one rsqrt per row
        bytes_accessed=(N_pad * D * x_itemsize + N_pad * E * 4
                        + D * P * jnp.dtype(w.dtype).itemsize
                        + P * E * 4 + P * 4),
    )

    out = pl.pallas_call(
        _cosine_gate_kernel,
        out_shape=jax.ShapeDtypeStruct((N_pad, E), jnp.float32),
        grid_spec=pltpu.PrefetchScalarGridSpec(
            num_scalar_prefetch=0,
            grid=(N_pad // tm_eff,),
            in_specs=[
                # x: tiled over token rows
                pl.BlockSpec((tm_eff, D), lambda i: (i, 0)),
                # projector weight / bias / pre-scaled sim: full, VMEM-resident
                pl.BlockSpec((D, P), lambda i: (0, 0)),
                pl.BlockSpec((1, P), lambda i: (0, 0)),
                pl.BlockSpec((P, E), lambda i: (0, 0)),
            ],
            out_specs=pl.BlockSpec((tm_eff, E), lambda i: (i, 0)),
        ),
        compiler_params=pltpu.CompilerParams(
            dimension_semantics=("parallel",)),
        cost_estimate=cost,
    )(x_in, w, b2, sim_scaled)

    return out[:N] if N_pad != N else out


def cosine_topk_gate_ref(x, w, b, sim_matrix, temperature):
    """Pure-JAX reference (mirrors the PyTorch forward)."""
    proj = x.astype(jnp.float32) @ w.astype(jnp.float32) + b.astype(jnp.float32)
    proj_n = proj / jnp.maximum(
        jnp.linalg.norm(proj, axis=1, keepdims=True), EPS)
    sim = sim_matrix.astype(jnp.float32)
    sim_n = sim / jnp.maximum(
        jnp.linalg.norm(sim, axis=0, keepdims=True), EPS)
    logits = proj_n @ sim_n
    scale = jnp.exp(jnp.minimum(temperature.astype(jnp.float32)[0], CLAMP_MAX))
    return logits * scale


if __name__ == "__main__":
    # Small, deterministic config consistent with the module:
    #   tokens = batch*seq = 2*8 = 16, model_dim = 32, proj_dim = 256, experts = 4
    batch, seq = 2, 8
    model_dim, proj_dim, num_experts = 32, 256, 4
    init_t = 0.5

    key = jax.random.PRNGKey(0)
    kx, kw, kb, ks = jax.random.split(key, 4)

    N = batch * seq
    x = jax.random.normal(kx, (N, model_dim), dtype=jnp.float32)

    # Deterministic synthetic parameters (shapes match nn.Linear / sim_matrix init).
    w = jax.random.normal(kw, (model_dim, proj_dim), dtype=jnp.float32) * (
        1.0 / math.sqrt(model_dim))                       # linear.weight.T
    b = jax.random.normal(kb, (proj_dim,), dtype=jnp.float32) * (
        1.0 / math.sqrt(model_dim))                       # linear.bias
    sim_matrix = jax.random.normal(
        ks, (proj_dim, num_experts), dtype=jnp.float32) * 0.01
    temperature = jnp.full((1,), math.log(1.0 / init_t), dtype=jnp.float32)

    logits = cosine_topk_gate(x, w, b, sim_matrix, temperature)
    jax.block_until_ready(logits)

    ref = cosine_topk_gate_ref(x, w, b, sim_matrix, temperature)
    assert logits.shape == (N, num_experts)
    assert jnp.allclose(logits, ref, atol=1e-5, rtol=1e-5), "mismatch vs reference"

    print("KERNEL_OK")
</pallas_src>

<mosaic_0001>
module attributes {stable_mosaic.version = 11 : i64} {
  func.func @_cosine_gate_kernel(%arg0: i32, %arg1: memref<8x32xf32, #tpu.memory_space<vmem>>, %arg2: memref<32x256xf32, #tpu.memory_space<vmem>>, %arg3: memref<1x256xf32, #tpu.memory_space<vmem>>, %arg4: memref<256x4xf32, #tpu.memory_space<vmem>>, %arg5: memref<8x4xf32, #tpu.memory_space<vmem>>) attributes {dimension_semantics = [#tpu.dimension_semantics<parallel>], iteration_bounds = array<i64: 2>, scalar_prefetch = 0 : i64, scratch_operands = 0 : i64, tpu.core_type = #tpu.core_type<tc>, window_params = [{transform_indices = @transform_0, window_bounds = array<i64: 8, 32>}, {pipeline_mode = #tpu.pipeline_mode<synchronous>, transform_indices = @transform_1, window_bounds = array<i64: 32, 256>}, {pipeline_mode = #tpu.pipeline_mode<synchronous>, transform_indices = @transform_2, window_bounds = array<i64: 1, 256>}, {pipeline_mode = #tpu.pipeline_mode<synchronous>, transform_indices = @transform_3, window_bounds = array<i64: 256, 4>}, {transform_indices = @transform_4, window_bounds = array<i64: 8, 4>}]} {
    %c0 = arith.constant 0 : index
    %c0_0 = arith.constant 0 : index
    %0 = vector.load %arg1[%c0, %c0_0] : memref<8x32xf32, #tpu.memory_space<vmem>>, vector<8x32xf32>
    %c0_1 = arith.constant 0 : index
    %c0_2 = arith.constant 0 : index
    %1 = vector.load %arg2[%c0_1, %c0_2] : memref<32x256xf32, #tpu.memory_space<vmem>>, vector<32x256xf32>
    %cst = arith.constant dense<0.000000e+00> : vector<8x256xf32>
    %2 = tpu.matmul %0, %1, %cst {dimension_numbers = #tpu.dot_dimension_numbers<[1], [0], [0], [1], [0, 0, 1, 1], [], []>} : vector<8x32xf32>, vector<32x256xf32>, vector<8x256xf32> -> vector<8x256xf32>
    %c0_3 = arith.constant 0 : index
    %c0_4 = arith.constant 0 : index
    %3 = vector.load %arg3[%c0_3, %c0_4] : memref<1x256xf32, #tpu.memory_space<vmem>>, vector<1x256xf32>
    %4 = vector.broadcast %3 : vector<1x256xf32> to vector<8x256xf32>
    %5 = arith.addf %2, %4 : vector<8x256xf32>
    %6 = arith.mulf %5, %5 : vector<8x256xf32>
    %cst_5 = arith.constant dense<0.000000e+00> : vector<8xf32>
    %7 = vector.multi_reduction <add>, %6, %cst_5 [1] : vector<8x256xf32> to vector<8xf32>
    %8 = vector.shape_cast %7 : vector<8xf32> to vector<8x1xf32>
    %cst_6 = arith.constant 1.000000e-24 : f32
    %9 = vector.broadcast %cst_6 : f32 to vector<8x1xf32>
    %10 = arith.maximumf %8, %9 : vector<8x1xf32>
    %11 = math.rsqrt %10 : vector<8x1xf32>
    %12 = vector.broadcast %11 : vector<8x1xf32> to vector<8x256xf32>
    %13 = arith.mulf %5, %12 : vector<8x256xf32>
    %c0_7 = arith.constant 0 : index
    %c0_8 = arith.constant 0 : index
    %14 = vector.load %arg4[%c0_7, %c0_8] : memref<256x4xf32, #tpu.memory_space<vmem>>, vector<256x4xf32>
    %cst_9 = arith.constant dense<0.000000e+00> : vector<8x4xf32>
    %15 = tpu.matmul %13, %14, %cst_9 {dimension_numbers = #tpu.dot_dimension_numbers<[1], [0], [0], [1], [0, 0, 1, 1], [], []>} : vector<8x256xf32>, vector<256x4xf32>, vector<8x4xf32> -> vector<8x4xf32>
    %c0_10 = arith.constant 0 : index
    %c0_11 = arith.constant 0 : index
    %16 = vector.load %arg5[%c0_10, %c0_11] : memref<8x4xf32, #tpu.memory_space<vmem>>, vector<8x4xf32>
    tpu.vector_store %arg5[%c0_10, %c0_11], %15 {strides = array<i32>} : memref<8x4xf32, #tpu.memory_space<vmem>>, vector<8x4xf32>,
    return
  }
  func.func @transform_0(%arg0: i32) -> (i32, i32) {
    %c0_i32 = arith.constant 0 : i32
    %c0_i32_0 = arith.constant 0 : i32
    return %arg0, %c0_i32 : i32, i32
  }
  func.func @transform_1(%arg0: i32) -> (i32, i32) {
    %c0_i32 = arith.constant 0 : i32
    %c0_i32_0 = arith.constant 0 : i32
    %c0_i32_1 = arith.constant 0 : i32
    return %c0_i32, %c0_i32_0 : i32, i32
  }
  func.func @transform_2(%arg0: i32) -> (i32, i32) {
    %c0_i32 = arith.constant 0 : i32
    %c0_i32_0 = arith.constant 0 : i32
    %c0_i32_1 = arith.constant 0 : i32
    return %c0_i32, %c0_i32_0 : i32, i32
  }
  func.func @transform_3(%arg0: i32) -> (i32, i32) {
    %c0_i32 = arith.constant 0 : i32
    %c0_i32_0 = arith.constant 0 : i32
    %c0_i32_1 = arith.constant 0 : i32
    return %c0_i32, %c0_i32_0 : i32, i32
  }
  func.func @transform_4(%arg0: i32) -> (i32, i32) {
    %c0_i32 = arith.constant 0 : i32
    %c0_i32_0 = arith.constant 0 : i32
    return %arg0, %c0_i32 : i32, i32
  }
}

</mosaic_0001>

<bundles_post_ra>
// kernel: tpu_custom_call.1
= control target key start
LH: loop header
LB: loop body
LE: loop exit
PB: predicated region body
PF: predicated region fallthrough
CT: control target
= control target key end

     0   :  { %s585_s15 = smov 0   ;;  %s732_s0 = inlined_call_operand.vmem [shape: f32[16,32], index: 0, kind: input, shape index: {}]   ;;  %s733_s1 = inlined_call_operand.vmem [shape: f32[32,256], index: 1, kind: input, shape index: {}]   ;;  %s734_s2 = inlined_call_operand.vmem [shape: f32[1,256], index: 2, kind: input, shape index: {}]   ;;  %s735_s3 = inlined_call_operand.vmem [shape: f32[256,4], index: 3, kind: input, shape index: {}]   ;;  %s736_s4 = inlined_call_operand.vmem [shape: f32[16,4], index: 4, kind: output, shape index: {}]  }
   0x1 LB: > { %s455_s16 = sadd.s32 4294967295, %s557_s15   ;;  %p459_p0 = scmp.ge.s32.totalorder %s557_s15, 1  ;;  %s557_s15 = sphi %s585_s15, %s14_s15  }
   0x2   : > { %p161_p1 = scmp.lt.s32.totalorder %s557_s15, 3 }
   0x4   : > { %p162_p2 = pnand %p459_p0, %p161_p1 }
   0x5   : > { %v195_v0 = vld [vmem:[%s733_s1 + $0x8] sm:$0xff] (!%p162_p2)  ;;  %v197_v1 = vld [vmem:[%s733_s1 + $0x18] sm:$0xff] (!%p162_p2)  ;;  %v194_v2 = vld [vmem:[%s733_s1] sm:$0xff] (!%p162_p2)  ;;  %p185_p3 = scmp.lt.s32.totalorder (!%p162_p2), %s455_s16, 1  ;;  %v559_v7 = vmov (!%p162_p2), 0.0   ;;  %vm214_vm0 = vcmask (!%p162_p2), 261120   ;;  %v204_v38 = vlaneseq (!%p162_p2) }
   0x6   : > { %165 = sbr.rel (%p162_p2) target bundleno = 610 (0x262), region = 36  ;;  %v500_v3 = vpack.c.bf16 (!%p162_p2), %v197_v1, %v195_v0  ;;  %v196_v4 = vld [vmem:[%s733_s1 + $0x10] sm:$0xff] (!%p162_p2)  ;;  %v199_v5 = vld [vmem:[%s733_s1 + $0x28] sm:$0xff] (!%p162_p2)  ;;  %v201_v6 = vld [vmem:[%s733_s1 + $0x38] sm:$0xff] (!%p162_p2)  ;;  %282 = vmatprep.mubr.f32.mxu0 (!%p162_p2), %v559_v7  ;;  %vm400_vm1 = vcmask (!%p162_p2), 31744  }
   0x7   : > { %v502_v8 = vpack.c.bf16 (!%p162_p2), %v196_v4, %v194_v2  ;;  %v504_v9 = vpack.c.bf16 (!%p162_p2), %v201_v6, %v199_v5  ;;  %v198_v10 = vld [vmem:[%s733_s1 + $0x20] sm:$0xff] (!%p162_p2)  ;;  %v200_v11 = vld [vmem:[%s733_s1 + $0x30] sm:$0xff] (!%p162_p2)  ;;  %v315_v15 = vld [vmem:[%s735_s3 + $0x88] sm:$0xff] (!%p162_p2)  ;;  %v205_v39 = vshrl.u32 (!%p162_p2), %v204_v38, 7 }
   0x8   : > { %501 = vmatprep.subr.bf16.mxu0 (!%p162_p2), %v500_v3  ;;  %v506_v12 = vpack.c.bf16 (!%p162_p2), %v200_v11, %v198_v10  ;;  %v314_v14 = vld [vmem:[%s735_s3 + $0x80] sm:$0xff] (!%p162_p2)  ;;  %v299_v18 = vld [vmem:[%s735_s3 + $0x8] sm:$0xff] (!%p162_p2)  ;;  %v316_v19 = vld [vmem:[%s735_s3 + $0x90] sm:$0xff] (!%p162_p2) }
   0x9   : > { %503 = vmatpush1.bf16.msra.mxu0 (!%p162_p2), %v502_v8  ;;  %v298_v16 = vld [vmem:[%s735_s3] sm:$0xff] (!%p162_p2)  ;;  %v508_v17 = vpack.c.bf16 (!%p162_p2), %v315_v15, %v314_v14  ;;  %v317_v20 = vld [vmem:[%s735_s3 + $0x98] sm:$0xff] (!%p162_p2)  ;;  %v300_v23 = vld [vmem:[%s735_s3 + $0x10] sm:$0xff] (!%p162_p2)  ;;  %v206_v40 = vsub.s32 (!%p162_p2), 0, %v205_v39  ;;  %v210_v42 = vsub.s32 (!%p162_p2), 1, %v205_v39 }
   0xa   : > { %505 = vmatprep.subr.bf16.mxu0 (!%p162_p2), %v504_v9  ;;  %v510_v21 = vpack.c.bf16 (!%p162_p2), %v299_v18, %v298_v16  ;;  %v512_v22 = vpack.c.bf16 (!%p162_p2), %v317_v20, %v316_v19  ;;  %v301_v24 = vld [vmem:[%s735_s3 + $0x18] sm:$0xff] (!%p162_p2)  ;;  %v318_v25 = vld [vmem:[%s735_s3 + $0xa0] sm:$0xff] (!%p162_p2)  ;;  %v319_v26 = vld [vmem:[%s735_s3 + $0xa8] sm:$0xff] (!%p162_p2) }
   0xb   : > { %509 = vmatprep.subr.bf16.mxu1 (!%p162_p2), %v508_v17  ;;  %v514_v27 = vpack.c.bf16 (!%p162_p2), %v301_v24, %v300_v23  ;;  %v516_v28 = vpack.c.bf16 (!%p162_p2), %v319_v26, %v318_v25  ;;  %v302_v29 = vld [vmem:[%s735_s3 + $0x20] sm:$0xff] (!%p162_p2)  ;;  %v303_v30 = vld [vmem:[%s735_s3 + $0x28] sm:$0xff] (!%p162_p2)  ;;  %v320_v31 = vld [vmem:[%s735_s3 + $0xb0] sm:$0xff] (!%p162_p2) }
   0xc   : > { %511 = vmatpush3.bf16.msra.mxu1 (!%p162_p2), %v510_v21  ;;  %v321_v32 = vld [vmem:[%s735_s3 + $0xb8] sm:$0xff] (!%p162_p2)  ;;  %v518_v33 = vpack.c.bf16 (!%p162_p2), %v303_v30, %v302_v29  ;;  %v304_v35 = vld [vmem:[%s735_s3 + $0x30] sm:$0xff] (!%p162_p2)  ;;  %v202_v41 = vld [vmem:[%s734_s2] sm:$0x3] (!%p162_p2) }
   0xd   : > { %s738_s16 = smov (!%p185_p3, %s455_s16), 1  ;;  %507 = vmatpush1.bf16.msra.mxu0 %v506_v12  ;;  %513 = vmatprep.subr.bf16.mxu1 %v512_v22  ;;  %v520_v34 = vpack.c.bf16 %v321_v32, %v320_v31  ;;  %v305_v36 = vld [vmem:[%s735_s3 + $0x38] sm:$0xff]  ;;  %v207_v43 = vrot.slane %v202_v41, %v206_v40  ;;  %v211_v44 = vrot.slane %v202_v41, %v210_v42  ;;  %v322_v52 = vld [vmem:[%s735_s3 + $0xc0] sm:$0xff]  ;;  %v323_v53 = vld [vmem:[%s735_s3 + $0xc8] sm:$0xff] }
   0xe   : > { %s460_s7 = sshll.u32 %s738_s16, 3  ;;  %v522_v37 = vpack.c.bf16 %v305_v36, %v304_v35  ;;  %v524_v54 = vpack.c.bf16 %v323_v53, %v322_v52  ;;  %v306_v55 = vld [vmem:[%s735_s3 + $0x40] sm:$0xff]  ;;  %v307_v56 = vld [vmem:[%s735_s3 + $0x48] sm:$0xff]  ;;  %v324_v58 = vld [vmem:[%s735_s3 + $0xd0] sm:$0xff] }
   0xf   : > { %s188_s10 = scalar_lea.vmem %s732_s0, %s460_s7  ;;  %v526_v57 = vpack.c.bf16 %v307_v56, %v306_v55  ;;  %v325_v59 = vld [vmem:[%s735_s3 + $0xd8] sm:$0xff]  ;;  %v308_v61 = vld [vmem:[%s735_s3 + $0x50] sm:$0xff]  ;;  %v326_v63 = vld [vmem:[%s735_s3 + $0xe0] sm:$0xff] }
  0x10   : > { %v193_v13 = vld [vmem:[%s188_s10] sm:$0xff]  ;;  %515 = vmatpush3.bf16.msra.mxu1 %v514_v27  ;;  %v528_v60 = vpack.c.bf16 %v325_v59, %v324_v58  ;;  %v309_v62 = vld [vmem:[%s735_s3 + $0x58] sm:$0xff]  ;;  %v327_v1 = vld [vmem:[%s735_s3 + $0xe8] sm:$0xff]  ;;  %s192_s10 = scalar_lea.vmem %s736_s4, %s460_s7 }
  0x11   : > { %462 = vmatmul.mubr.msk.f32.vlgmr.msra.gmra.mrb[0].mxu0 %vm214_vm0, %v193_v13  ;;  %517 = vmatprep.subr.bf16.mxu1 %v516_v28  ;;  %v530_v0 = vpack.c.bf16 %v309_v62, %v308_v61  ;;  %v310_v2 = vld [vmem:[%s735_s3 + $0x60] sm:$0xff]  ;;  %v311_v3 = vld [vmem:[%s735_s3 + $0x68] sm:$0xff]  ;;  %v532_v4 = vpack.c.bf16 %v327_v1, %v326_v63  ;;  %v328_v5 = vld [vmem:[%s735_s3 + $0xf0] sm:$0xff] }
  0x12   : > { %v329_v6 = vld [vmem:[%s735_s3 + $0xf8] sm:$0xff]  ;;  %v534_v7 = vpack.c.bf16 %v311_v3, %v310_v2  ;;  %v312_v9 = vld [vmem:[%s735_s3 + $0x70] sm:$0xff] }
  0x13   : > { %v536_v8 = vpack.c.bf16 %v329_v6, %v328_v5  ;;  %v313_v10 = vld [vmem:[%s735_s3 + $0x78] sm:$0xff] }
  0x14   : > { %519 = vmatpush3.bf16.msra.mxu1 %v518_v33  ;;  %v538_v11 = vpack.c.bf16 %v313_v10, %v312_v9 }
  0x15   : > { %521 = vmatprep.subr.bf16.mxu1 %v520_v34 }
  0x18   : > { %523 = vmatpush3.bf16.msra.mxu1 %v522_v37 }
  0x19   : > { %525 = vmatprep.subr.bf16.mxu1 %v524_v54 }
  0x1c   : > { %527 = vmatpush3.bf16.msra.mxu1 %v526_v57 }
  0x1d   : > { %529 = vmatprep.subr.bf16.mxu1 %v528_v60 }
  0x20   : > { %531 = vmatpush3.bf16.msra.mxu1 %v530_v0 }
  0x21   : > { %533 = vmatprep.subr.bf16.mxu1 %v532_v4 }
  0x24   : > { %535 = vmatpush3.bf16.msra.mxu1 %v534_v7 }
  0x25   : > { %537 = vmatprep.subr.bf16.mxu1 %v536_v8 }
  0x28   : > { %539 = vmatpush3.bf16.msra.mxu1 %v538_v11 }
  0xe4   : > { %v284_v45 = vpop.f32.mrb[0].mxu0 }
  0xe5   : > { %v285_v46 = vadd.f32 %v284_v45, %v207_v43  ;;  %v286_v47 = vpop.f32.mrb[1].mxu0 }
  0xe6   : > { %v287_v48 = vadd.f32 %v286_v47, %v211_v44 }
  0xe7   : > { %v289_v49 = vmul.f32 %v285_v46, %v285_v46 }
  0xe8   : > { %v290_v50 = vmul.f32 %v287_v48, %v287_v48 }
  0xea   : > { %v291_v51 = vadd.f32 %v290_v50, %v289_v49 }
  0xec   : > { %292 = vadd.xlane.f32.xlu0 %v291_v51 }
 0x179   : > { %v293_v12 = vpop.xlane.xlu0 %292 }
 0x17a   : > { %v294_v13 = vmax.f32 %v293_v12, 1e-24 }
 0x17c   : > { %549 = vrsqrt.f32 %v294_v13 }
 0x186   : > { %v550_v14 = vpop.eup %549 }
 0x187   : > { %v297_v15 = vmul.f32 %v550_v14, %v287_v48  ;;  %v296_v16 = vmul.f32 %v550_v14, %v285_v46 }
 0x189   : > { %394 = vmatprep.mubr.f32.mxu1 %v297_v15 }
 0x18a   : > { %395 = vmatmul.mubr.f32.vlgmr.msra.gmra.mrb[0].mxu1 %v296_v16 }
 0x25d   : > { %v497_v17 = vpop.f32.mrb[0].mxu1 }
 0x25e   : > { %v498_v18 = vpop.f32.mrb[1].mxu1 }
 0x25f   : > { %v499_v19 = vadd.f32 %v498_v18, %v497_v17 }
 0x261   : > { %401 = vst.msk [vmem:[%s192_s10] sm:$0xff] %vm400_vm1, %v499_v19 }
 0x262 PF: > { %s14_s15 = sadd.s32 1, %s557_s15  }
 0x263   : > { %p11_p4 = scmp.ge.s32.totalorder %s14_s15, 4  }
 0x265   :  { %13 = sbr.rel (!%p11_p4) target bundleno = 1 (0x1), region = 66 }

</bundles_post_ra>
